<compile_context>
chip_gen: v7x
topology: tpu7x:2x2x1
jax: 0.10.0
libtpu: 0.0.40
codegen_flags: <defaults>
</compile_context>

<pallas_src>
import jax
import jax.numpy as jnp
from jax import lax
from jax.experimental import pallas as pl
from jax.experimental.pallas import tpu as pltpu

EPS = 1e-12  # F.normalize default eps (applied to the L2 norm)


# ----------------------------------------------------------------------------
# Kernels: pure tiled matmul with a finalize scale by precomputed inverse
# norms.  Grid = (M/tm, N/tn, K/tk); K is the last ("arbitrary") axis.
# ----------------------------------------------------------------------------
def _nl_kernel_acc_out(x_ref, w_ref, rx_ref, cw_ref, o_ref):
    """f32 output: accumulate matmul partials directly into the resident
    output block, scale once at the last K step (no scratch, no final copy)."""
    k = pl.program_id(2)

    @pl.when(k == 0)
    def _init():
        o_ref[...] = jnp.zeros_like(o_ref)

    o_ref[...] += jnp.dot(x_ref[...], w_ref[...],
                          preferred_element_type=jnp.float32)

    @pl.when(k == pl.num_programs(2) - 1)
    def _finalize():
        o_ref[...] = o_ref[...] * rx_ref[...] * cw_ref[...]


def _nl_kernel_scratch(x_ref, w_ref, rx_ref, cw_ref, o_ref, acc_ref):
    """Non-f32 output: f32 scratch accumulator, scale + cast once at the end."""
    k = pl.program_id(2)

    @pl.when(k == 0)
    def _init():
        acc_ref[...] = jnp.zeros_like(acc_ref)

    acc_ref[...] += jnp.dot(x_ref[...], w_ref[...],
                            preferred_element_type=jnp.float32)

    @pl.when(k == pl.num_programs(2) - 1)
    def _finalize():
        o_ref[...] = (acc_ref[...] * rx_ref[...] * cw_ref[...]
                      ).astype(o_ref.dtype)


# ----------------------------------------------------------------------------
# Wrapper
# ----------------------------------------------------------------------------
def _round_up(v, m):
    return ((v + m - 1) // m) * m


def _sublane(dtype):
    # rows packed per vreg: 8 for 4-byte, 16 for bf16/f16, 32 for int8/fp8.
    return max(8, 32 // jnp.dtype(dtype).itemsize)


def _pick_tile(dim, cap, align):
    """Return (tile, padded_dim).  Full-dim blocks (no padding, legal even when
    unaligned) whenever dim <= cap; otherwise an `align`-aligned tile <= cap
    and the dim padded to a multiple of it (waste minimized by splitting into
    ceil(dim/cap) blocks)."""
    if dim <= cap:
        return dim, dim
    nblocks = -(-dim // cap)
    tile = _round_up(-(-dim // nblocks), align)
    return tile, tile * nblocks


def normed_linear(x, weight, *, tm=None, tn=None, tk=None):
    n, k_in = x.shape
    k_w, n_out = weight.shape
    assert k_in == k_w
    out_dtype = x.dtype
    sub = _sublane(x.dtype)

    # Tiny inverse-norm vectors, computed ONCE here (single fused XLA pass)
    # instead of redundantly for every (i, j) tile pair inside the grid.  The
    # heavy per-element scaling still happens in-kernel at finalize time.
    xf = x.astype(jnp.float32)
    wf = weight.astype(jnp.float32)
    x_inv = lax.rsqrt(jnp.maximum(jnp.sum(xf * xf, axis=1, keepdims=True),
                                  EPS * EPS))                  # (n, 1)
    w_inv = lax.rsqrt(jnp.maximum(jnp.sum(wf * wf, axis=0, keepdims=True),
                                  EPS * EPS))                  # (1, n_out)

    # ---- tile selection (MXU/lane aligned, biggest that fits VMEM budget) ---
    if tm is None:
        tm, pm = _pick_tile(n, 512, sub)
    else:
        pm = _round_up(n, tm)
    if tn is None:
        tn, pn = _pick_tile(n_out, 512, 128)
    else:
        pn = _round_up(n_out, tn)
    if tk is None:
        tk, pk = _pick_tile(k_in, 1024, 128)
    else:
        pk = _round_up(k_in, tk)

    # v7x has 2 TensorCores: ensure at least one "parallel" axis has >= 2
    # blocks when it can be split with no extra padding.
    if pm // tm == 1 and pn // tn == 1:
        if n_out >= 256 and n_out % 256 == 0:
            tn = n_out // 2           # multiple of 128, pn unchanged
        elif n >= 2 * sub and n % (2 * sub) == 0:
            tm = n // 2               # multiple of sub, pm unchanged

    grid = (pm // tm, pn // tn, pk // tk)

    # Zero padding only where a *tiled* dim is misaligned.  Zero padding is
    # exact (adds nothing to the dot products); padded rows/cols are sliced
    # away below.  Padded inverse norms are set to 0 so padded outputs are 0.
    xp = x if (pm == n and pk == k_in) else jnp.pad(
        x, ((0, pm - n), (0, pk - k_in)))
    wp = weight if (pk == k_in and pn == n_out) else jnp.pad(
        weight, ((0, pk - k_in), (0, pn - n_out)))
    x_inv_p = x_inv if pm == n else jnp.pad(x_inv, ((0, pm - n), (0, 0)))
    w_inv_p = w_inv if pn == n_out else jnp.pad(w_inv, ((0, 0), (0, pn - n_out)))

    in_specs = [
        pl.BlockSpec((tm, tk), lambda i, j, kk: (i, kk)),   # x
        pl.BlockSpec((tk, tn), lambda i, j, kk: (kk, j)),   # w
        pl.BlockSpec((tm, 1), lambda i, j, kk: (i, 0)),     # row inv norms
        pl.BlockSpec((1, tn), lambda i, j, kk: (0, j)),     # col inv norms
    ]
    out_spec = pl.BlockSpec((tm, tn), lambda i, j, kk: (i, j))

    if out_dtype == jnp.float32:
        kernel = _nl_kernel_acc_out
        scratch_shapes = []
    else:
        kernel = _nl_kernel_scratch
        scratch_shapes = [pltpu.VMEM((tm, tn), jnp.float32)]

    # VMEM budget estimate: double-buffered inputs + resident output (+ acc).
    # ~10-16 MiB at the default 512/512/1024 tiles -> fits every generation
    # (v7x: 64 MiB physical / 32 MiB default scoped).
    itemsize = jnp.dtype(x.dtype).itemsize
    est = 2 * (tm * tk + tk * tn) * itemsize              # double-buffered in
    est += 2 * (tm + tn) * 4                              # norm vectors
    est += 2 * tm * tn * jnp.dtype(out_dtype).itemsize    # output block
    est += tm * tn * 4 if scratch_shapes else 0           # f32 accumulator
    vmem_limit = int(min(max(2 * est, 32 << 20), 64 << 20))  # v7x-safe cap

    out = pl.pallas_call(
        kernel,
        out_shape=jax.ShapeDtypeStruct((pm, pn), out_dtype),
        grid=grid,
        in_specs=in_specs,
        out_specs=out_spec,
        scratch_shapes=scratch_shapes,
        compiler_params=pltpu.CompilerParams(
            # M/N shard across TensorCores (2 on v7x); K is the reduction.
            dimension_semantics=("parallel", "parallel", "arbitrary"),
            vmem_limit_bytes=vmem_limit,
        ),
        cost_estimate=pl.CostEstimate(
            flops=2 * n * n_out * k_in,
            transcendentals=0,
            bytes_accessed=(x.size + weight.size) * itemsize
            + n * n_out * jnp.dtype(out_dtype).itemsize,
        ),
    )(xp, wp, x_inv_p, w_inv_p)

    if pm != n or pn != n_out:
        out = out[:n, :n_out]
    return out


# ----------------------------------------------------------------------------
# Weight init + pure-JAX reference (for the correctness check)
# ----------------------------------------------------------------------------
def init_weight(key, in_features, out_features):
    """Replicates: torch.Tensor(in,out).uniform_(-1,1).renorm_(2,1,1e-5).mul_(1e5)

    renorm_(p=2, dim=1, maxnorm=1e-5): each column is rescaled so its L2 norm
    is <= 1e-5; then multiplied by 1e5 -> column norms <= 1.
    """
    w = jax.random.uniform(
        key, (in_features, out_features), dtype=jnp.float32,
        minval=-1.0, maxval=1.0)
    maxnorm = 1e-5
    col_norm = jnp.sqrt(jnp.sum(w * w, axis=0, keepdims=True))
    scale = jnp.where(col_norm > maxnorm, maxnorm / (col_norm + 1e-7), 1.0)
    return w * scale * 1e5


def normed_linear_ref(x, weight):
    xn = x / jnp.maximum(jnp.linalg.norm(x, axis=1, keepdims=True), EPS)
    wn = weight / jnp.maximum(jnp.linalg.norm(weight, axis=0, keepdims=True), EPS)
    return xn @ wn


if __name__ == "__main__":
    key = jax.random.PRNGKey(0)
    kx, kw = jax.random.split(key)

    batch = 8
    in_features = 32
    out_features = 16

    x = jax.random.normal(kx, (batch, in_features), dtype=jnp.float32)
    weight = init_weight(kw, in_features, out_features)

    out = jax.jit(normed_linear)(x, weight)
    out = jax.block_until_ready(out)

    ref = normed_linear_ref(x, weight)
    assert out.shape == (batch, out_features)
    assert jnp.allclose(out, ref, atol=1e-5, rtol=1e-5), float(
        jnp.max(jnp.abs(out - ref)))

    print("KERNEL_OK")
</pallas_src>

<mosaic_0001>
module attributes {stable_mosaic.version = 11 : i64} {
  func.func @_nl_kernel_acc_out(%arg0: i32, %arg1: i32, %arg2: i32, %arg3: memref<8x32xf32, #tpu.memory_space<vmem>>, %arg4: memref<32x16xf32, #tpu.memory_space<vmem>>, %arg5: memref<8x1xf32, #tpu.memory_space<vmem>>, %arg6: memref<1x16xf32, #tpu.memory_space<vmem>>, %arg7: memref<8x16xf32, #tpu.memory_space<vmem>>) attributes {dimension_semantics = [#tpu.dimension_semantics<parallel>, #tpu.dimension_semantics<parallel>, #tpu.dimension_semantics<arbitrary>], iteration_bounds = array<i64: 1, 1, 1>, scalar_prefetch = 0 : i64, scratch_operands = 0 : i64, tpu.core_type = #tpu.core_type<tc>, window_params = [{transform_indices = @transform_0, window_bounds = array<i64: 8, 32>}, {transform_indices = @transform_1, window_bounds = array<i64: 32, 16>}, {transform_indices = @transform_2, window_bounds = array<i64: 8, 1>}, {transform_indices = @transform_3, window_bounds = array<i64: 1, 16>}, {transform_indices = @transform_4, window_bounds = array<i64: 8, 16>}]} {
    %c0_i32 = arith.constant 0 : i32
    %0 = arith.cmpi eq, %arg2, %c0_i32 : i32
    %1 = arith.extui %0 : i1 to i32
    %c0_i32_0 = arith.constant 0 : i32
    %2 = arith.cmpi ne, %1, %c0_i32_0 : i32
    scf.if %2 {
      %cst_10 = arith.constant 0.000000e+00 : f32
      %12 = vector.broadcast %cst_10 : f32 to vector<8x16xf32>
      %c0_11 = arith.constant 0 : index
      %c0_12 = arith.constant 0 : index
      %13 = vector.load %arg7[%c0_11, %c0_12] : memref<8x16xf32, #tpu.memory_space<vmem>>, vector<8x16xf32>
      tpu.vector_store %arg7[%c0_11, %c0_12], %12 {strides = array<i32>} : memref<8x16xf32, #tpu.memory_space<vmem>>, vector<8x16xf32>,
    } else {
    }
    %c0 = arith.constant 0 : index
    %c0_1 = arith.constant 0 : index
    %3 = vector.load %arg7[%c0, %c0_1] : memref<8x16xf32, #tpu.memory_space<vmem>>, vector<8x16xf32>
    %c0_2 = arith.constant 0 : index
    %c0_3 = arith.constant 0 : index
    %4 = vector.load %arg3[%c0_2, %c0_3] : memref<8x32xf32, #tpu.memory_space<vmem>>, vector<8x32xf32>
    %c0_4 = arith.constant 0 : index
    %c0_5 = arith.constant 0 : index
    %5 = vector.load %arg4[%c0_4, %c0_5] : memref<32x16xf32, #tpu.memory_space<vmem>>, vector<32x16xf32>
    %cst = arith.constant dense<0.000000e+00> : vector<8x16xf32>
    %6 = tpu.matmul %4, %5, %cst {dimension_numbers = #tpu.dot_dimension_numbers<[1], [0], [0], [1], [0, 0, 1, 1], [], []>} : vector<8x32xf32>, vector<32x16xf32>, vector<8x16xf32> -> vector<8x16xf32>
    %7 = arith.addf %3, %6 : vector<8x16xf32>
    %c0_6 = arith.constant 0 : index
    %c0_7 = arith.constant 0 : index
    %8 = vector.load %arg7[%c0_6, %c0_7] : memref<8x16xf32, #tpu.memory_space<vmem>>, vector<8x16xf32>
    tpu.vector_store %arg7[%c0_6, %c0_7], %7 {strides = array<i32>} : memref<8x16xf32, #tpu.memory_space<vmem>>, vector<8x16xf32>,
    %c0_i32_8 = arith.constant 0 : i32
    %9 = arith.cmpi eq, %arg2, %c0_i32_8 : i32
    %10 = arith.extui %9 : i1 to i32
    %c0_i32_9 = arith.constant 0 : i32
    %11 = arith.cmpi ne, %10, %c0_i32_9 : i32
    scf.if %11 {
      %c0_10 = arith.constant 0 : index
      %c0_11 = arith.constant 0 : index
      %12 = vector.load %arg7[%c0_10, %c0_11] : memref<8x16xf32, #tpu.memory_space<vmem>>, vector<8x16xf32>
      %c0_12 = arith.constant 0 : index
      %c0_13 = arith.constant 0 : index
      %13 = vector.load %arg5[%c0_12, %c0_13] : memref<8x1xf32, #tpu.memory_space<vmem>>, vector<8x1xf32>
      %14 = vector.broadcast %13 : vector<8x1xf32> to vector<8x16xf32>
      %15 = arith.mulf %12, %14 : vector<8x16xf32>
      %c0_14 = arith.constant 0 : index
      %c0_15 = arith.constant 0 : index
      %16 = vector.load %arg6[%c0_14, %c0_15] : memref<1x16xf32, #tpu.memory_space<vmem>>, vector<1x16xf32>
      %17 = vector.broadcast %16 : vector<1x16xf32> to vector<8x16xf32>
      %18 = arith.mulf %15, %17 : vector<8x16xf32>
      %c0_16 = arith.constant 0 : index
      %c0_17 = arith.constant 0 : index
      %19 = vector.load %arg7[%c0_16, %c0_17] : memref<8x16xf32, #tpu.memory_space<vmem>>, vector<8x16xf32>
      tpu.vector_store %arg7[%c0_16, %c0_17], %18 {strides = array<i32>} : memref<8x16xf32, #tpu.memory_space<vmem>>, vector<8x16xf32>,
    } else {
    }
    return
  }
  func.func @transform_0(%arg0: i32, %arg1: i32, %arg2: i32) -> (i32, i32) {
    %c0_i32 = arith.constant 0 : i32
    return %arg0, %arg2 : i32, i32
  }
  func.func @transform_1(%arg0: i32, %arg1: i32, %arg2: i32) -> (i32, i32) {
    %c0_i32 = arith.constant 0 : i32
    return %arg2, %arg1 : i32, i32
  }
  func.func @transform_2(%arg0: i32, %arg1: i32, %arg2: i32) -> (i32, i32) {
    %c0_i32 = arith.constant 0 : i32
    %c0_i32_0 = arith.constant 0 : i32
    return %arg0, %c0_i32 : i32, i32
  }
  func.func @transform_3(%arg0: i32, %arg1: i32, %arg2: i32) -> (i32, i32) {
    %c0_i32 = arith.constant 0 : i32
    %c0_i32_0 = arith.constant 0 : i32
    return %c0_i32, %arg1 : i32, i32
  }
  func.func @transform_4(%arg0: i32, %arg1: i32, %arg2: i32) -> (i32, i32) {
    %c0_i32 = arith.constant 0 : i32
    return %arg0, %arg1 : i32, i32
  }
}

</mosaic_0001>

<bundles_post_ra>
// kernel: normed_linear.1
= control target key start
LH: loop header
LB: loop body
LE: loop exit
PB: predicated region body
PF: predicated region fallthrough
CT: control target
= control target key end

     0   :  { %vm22_vm0 = vcmask 130048   ;;  %v195_v3 = vmov 0.0|0.0   ;;  %v196_v6 = vmov 0.0   ;;  %vm197_vm1 = vmmov 0   ;;  %s261_s0 = inlined_call_operand.vmem [shape: f32[8,32], index: 0, kind: input, shape index: {}]   ;;  %s262_s1 = inlined_call_operand.vmem [shape: f32[32,16], index: 1, kind: input, shape index: {}]   ;;  %s263_s2 = inlined_call_operand.vmem [shape: f32[8,1], index: 2, kind: input, shape index: {}]   ;;  %s264_s3 = inlined_call_operand.vmem [shape: f32[1,16], index: 3, kind: input, shape index: {}]   ;;  %s265_s4 = inlined_call_operand.hbm [shape: f32[8,16], index: 4, kind: output, shape index: {}]  }
   0x1   :  { %v26_v0 = vld [vmem:[%s262_s1] sm:$0xff]  ;;  %v27_v1 = vld [vmem:[%s262_s1 + $0x8] sm:$0xff]  ;;  %v28_v2 = vld [vmem:[%s262_s1 + $0x10] sm:$0xff]  ;;  %159 = vmatprep.subr.bf16.mxu0 %v195_v3  ;;  %23 = vst.msk [vmem:[#allocation2] sm:$0xff] %vm22_vm0, %v196_v6  ;;  %156 = vmatprep.mubr.msk.f32.mxu0 %vm197_vm1, %v196_v6  ;;  %v198_v8 = vmov 0  }
   0x2   :  { %v160_v4 = vpack.c.bf16 %v27_v1, %v26_v0  ;;  %v29_v5 = vld [vmem:[%s262_s1 + $0x18] sm:$0xff]  ;;  %v111_v7 = vld [vmem:[%s263_s2] sm:$0xff]  ;;  %170 = vset.pattern.permute.xlu0 %v198_v8 }
   0x3   :  { %9 = vsyncpa [#allocation3], 0  ;;  %v163_v9 = vpack.c.bf16 %v29_v5, %v28_v2  ;;  %114 = vperm.xlu0 %170, %v111_v7   ;;  %v25_v10 = vld [vmem:[%s261_s0] sm:$0xff]  ;;  %vm30_vm2 = vcmask 261120   ;;  %s199_s27 = smov [#allocation2]  }
   0x4   :  { %161 = vmatpush3.bf16.msra.mxu0 %v160_v4  ;;  %v142_v16 = vld [vmem:[%s264_s3] ss:$0 sm:$0xff]  ;;  %s133_s28 = sshll.u32 %s199_s27, 4  ;;  %s134_s28 = int_to_ptr.vmem [resolvable:$true] %s133_s28 }
   0x5   :  { %162 = vmatprep.subr.bf16.mxu0 %v195_v3  ;;  %s171_s0 = scalar_lea.vmem %s134_s28, 128  ;;  %p176_p1 = scmp.lt.s32.totalorder %s134_s28, %s134_s28 }
   0x6   :  { %p172_p0 = scmp.ne.s32.totalorder %s134_s28, %s171_s0  ;;  %p177_p2 = scmp.lt.s32.totalorder %s171_s0, %s171_s0 }
   0x8   :  { %164 = vmatpush3.bf16.msra.mxu0 %v163_v9  ;;  %v24_v11 = vld [vmem:[#allocation2] sm:$0xff]  ;;  %p178_p3 = por %p177_p2, %p176_p1 }
   0xa   :  { %p179_p4 = pnand %p178_p3, %p172_p0 }
   0xb   :  { %157 = vmatmul.mubr.msk.f32.vlgmr.msra.gmra.mrb[0].mxu0 %vm30_vm2, %v25_v10 }
  0x82   :  { %v115_v15 = vpop.permute.xlu0 %114 }
  0xde   :  { %v100_v12 = vpop.f32.mrb[0].mxu0 }
  0xdf   :  { %v104_v13 = vadd.f32 %v100_v12, %v24_v11  ;;  %v158_v14 = vpop.f32.mrb[1].mxu0 }
  0xe1   :  { %106 = vst.msk [vmem:[#allocation2] sm:$0xff] %vm22_vm0, %v104_v13 }
  0xe8   :  { %v110_v17 = vld [vmem:[#allocation2] sm:$0xff] }
  0xe9   :  { %v117_v18 = vmul.f32 %v115_v15, %v110_v17 }
  0xeb   :  { %v125_v19 = vmul.f32 %v142_v16, %v117_v18 }
  0xed   :  { %126 = vst.msk [vmem:[#allocation2] sm:$0xff] %vm22_vm0, %v125_v19 }
  0xee   :  { %182 = shalt.err (!%p179_p4)
}
  0xef   :  { %s183_s5 = scalar_lea.hbm %s265_s4, 128 }
  0xf0   :  { %p184_p5 = scmp.ne.s32.totalorder %s265_s4, %s183_s5  ;;  %p187_p6 = scmp.lt.u32.totalorder %s183_s5, %s265_s4 }
  0xf2   :  { %p189_p7 = pnand %p187_p6, %p184_p5 }
  0xf4   :  { %192 = shalt.err (!%p189_p7)
}
  0xf5   :  { %136 = dma.vmem_to_hbm [thread:$0]  %s134_s28, 128, %s265_s4, [#allocation3]  }
  0xf6   :  { %193 = dma.done.wait [#allocation3], 128  }
  0xf7   :  { %194 = vsyncadd [#allocation3], 4294967168 }
  0xf8   :  { %140 = vsyncpa [#allocation3], 1 }

</bundles_post_ra>
